<compile_context>
chip_gen: v6e
topology: v6e:2x2x1
jax: 0.10.0
libtpu: 0.0.40
codegen_flags: <defaults>
</compile_context>

<pallas_src>
import jax
import jax.numpy as jnp
import numpy as np
from jax.experimental import pallas as pl
from jax.experimental.pallas import tpu as pltpu

# Model hyper-parameters (LowFER.__init__ fixes out_dim = 200).
OUT_DIM = 200          # self.out_dim
RDIM = 32              # self.p.rdim (small)
K_RANK = 4             # self.p.k (MFB factorization rank)
NUM_ENTS = 128         # num_ents (small)
NUM_RELS = 4           # R has num_rels * 2 rows
BATCH = 4
BN_EPS = 1e-5          # PyTorch BatchNorm1d default eps
NORM_EPS = 1e-12       # F.normalize default eps / signed-sqrt eps


def lowfer_kernel(e1_ref, r_ref, u_ref, v_ref, et_ref,
                  s0_ref, b0_ref, s1_ref, b1_ref, out_ref):
    # e1_ref : (B, D)      gathered head embeddings
    # r_ref  : (B, RD)     gathered relation embeddings
    # u_ref  : (K, D, D)   U pre-permuted: U3[m, i, j] = U[i, j*K + m]
    # v_ref  : (K, RD, D)  V pre-permuted: V3[m, p, j] = V[p, j*K + m]
    # et_ref : (D, NE)     E transposed (all-entity scoring)
    # s*/b*  : (1, D)      eval-mode BatchNorm folded into affine scale/shift
    # out_ref: (B, NE)     sigmoid scores
    K = u_ref.shape[0]

    # bn0 (inference affine) + input_dropout (identity in eval) -- hoisted, once.
    e1n = e1_ref[...] * s0_ref[...] + b0_ref[...]                    # (B, D)
    r = r_ref[...]                                                   # (B, RD)

    # y[b, j] = sum_m (e1n @ U3[m])[b, j] * (r @ V3[m])[b, j]
    #         == (e1n @ U) * (r @ V) viewed as (B, D, K) and summed over K.
    y = jnp.zeros(e1n.shape, jnp.float32)
    for m in range(K):                                               # K is tiny & static
        xu = jnp.dot(e1n, u_ref[m], preferred_element_type=jnp.float32)  # (B, D)
        xv = jnp.dot(r, v_ref[m], preferred_element_type=jnp.float32)    # (B, D)
        y = y + xu * xv                                              # hidden_dropout1 = id

    # signed sqrt: sign(y) * sqrt(|y| + 1e-12)
    sgn = jnp.where(y > 0.0, 1.0, jnp.where(y < 0.0, -1.0, 0.0))
    y = sgn * jnp.sqrt(jnp.abs(y) + NORM_EPS)

    # F.normalize(p=2, dim=-1): y / max(||y||_2, eps)
    norm = jnp.sqrt(jnp.sum(y * y, axis=-1, keepdims=True))
    y = y / jnp.maximum(norm, NORM_EPS)

    # bn1 (eval affine) + hidden_dropout2 (identity)
    y = y * s1_ref[...] + b1_ref[...]

    # all-entity scoring + sigmoid; (B, D) @ (D, NE) -> lane-dense (B, NE)
    scores = jnp.dot(y, et_ref[...], preferred_element_type=jnp.float32)
    out_ref[...] = jax.nn.sigmoid(scores)


def lowfer_forward(E, R, U, V, bn0, bn1, e1_idx, r_idx):
    NE, D = E.shape
    RD = R.shape[1]
    K = U.shape[1] // D
    B = e1_idx.shape[0]

    # Glue: embedding gathers + layout plumbing (outside the kernel).
    e1 = E[e1_idx]                                        # (B, D)
    r = R[r_idx]                                          # (B, RD)
    # column c = j*K + m  ->  U3[m, i, j] = U[i, j*K + m]
    U3 = U.reshape(D, D, K).transpose(2, 0, 1)            # (K, D, D)
    V3 = V.reshape(RD, D, K).transpose(2, 0, 1)           # (K, RD, D)
    Et = E.T                                              # (D, NE)

    # Fold eval-mode BatchNorm into per-feature affine.
    def bn_affine(bn):
        gamma, beta, mean, var = bn
        scale = gamma / jnp.sqrt(var + BN_EPS)
        shift = beta - mean * scale
        return (scale[None, :].astype(jnp.float32),
                shift[None, :].astype(jnp.float32))

    s0, b0 = bn_affine(bn0)
    s1, b1 = bn_affine(bn1)

    out = pl.pallas_call(
        lowfer_kernel,
        out_shape=jax.ShapeDtypeStruct((B, NE), jnp.float32),
        grid=(1,),                                        # everything fits VMEM; 1 step
        in_specs=[
            pl.BlockSpec((B, D), lambda i: (0, 0)),       # e1 (whole batch)
            pl.BlockSpec((B, RD), lambda i: (0, 0)),      # r  (whole batch)
            pl.BlockSpec((K, D, D), lambda i: (0, 0, 0)),  # U3 (streamed once)
            pl.BlockSpec((K, RD, D), lambda i: (0, 0, 0)), # V3
            pl.BlockSpec((D, NE), lambda i: (0, 0)),      # E^T
            pl.BlockSpec((1, D), lambda i: (0, 0)),       # bn0 scale
            pl.BlockSpec((1, D), lambda i: (0, 0)),       # bn0 shift
            pl.BlockSpec((1, D), lambda i: (0, 0)),       # bn1 scale
            pl.BlockSpec((1, D), lambda i: (0, 0)),       # bn1 shift
        ],
        out_specs=pl.BlockSpec((B, NE), lambda i: (0, 0)),
        compiler_params=pltpu.CompilerParams(
            dimension_semantics=("arbitrary",)),
    )(e1, r, U3, V3, Et, s0, b0, s1, b1)
    return out                                            # (B, NE)


if __name__ == "__main__":
    key = jax.random.PRNGKey(0)
    (k_e, k_r, k_u, k_v, k_i1, k_i2,
     k_g0, k_b0, k_m0, k_v0, k_g1, k_b1, k_m1, k_v1) = jax.random.split(key, 14)

    # Deterministic parameter init mirroring the module's __init__ shapes.
    std_e = (2.0 / (NUM_ENTS + OUT_DIM)) ** 0.5           # xavier_normal
    std_r = (2.0 / (2 * NUM_RELS + RDIM)) ** 0.5          # xavier_normal
    E = std_e * jax.random.normal(k_e, (NUM_ENTS, OUT_DIM), jnp.float32)
    R = std_r * jax.random.normal(k_r, (2 * NUM_RELS, RDIM), jnp.float32)
    U = jax.random.uniform(k_u, (OUT_DIM, K_RANK * OUT_DIM), jnp.float32,
                           minval=-1.0, maxval=1.0)
    V = jax.random.uniform(k_v, (RDIM, K_RANK * OUT_DIM), jnp.float32,
                           minval=-1.0, maxval=1.0)

    # Non-trivial BatchNorm params / running stats to exercise the folding.
    def rand_bn(kg, kb, km, kv):
        gamma = 1.0 + 0.1 * jax.random.normal(kg, (OUT_DIM,), jnp.float32)
        beta = 0.1 * jax.random.normal(kb, (OUT_DIM,), jnp.float32)
        mean = 0.1 * jax.random.normal(km, (OUT_DIM,), jnp.float32)
        var = 1.0 + 0.2 * jax.random.uniform(kv, (OUT_DIM,), jnp.float32)
        return gamma, beta, mean, var

    bn0 = rand_bn(k_g0, k_b0, k_m0, k_v0)
    bn1 = rand_bn(k_g1, k_b1, k_m1, k_v1)

    e1_idx = jax.random.randint(k_i1, (BATCH,), 0, NUM_ENTS)
    r_idx = jax.random.randint(k_i2, (BATCH,), 0, 2 * NUM_RELS)

    pred = jax.block_until_ready(
        lowfer_forward(E, R, U, V, bn0, bn1, e1_idx, r_idx))
    assert pred.shape == (BATCH, NUM_ENTS)

    # Pure-JAX reference (same eval-mode semantics) for a sanity check.
    def reference():
        def aff(bn):
            g, b, m, v = bn
            s = g / jnp.sqrt(v + BN_EPS)
            return s, b - m * s
        s0, b0 = aff(bn0)
        s1, b1 = aff(bn1)
        e1 = E[e1_idx] * s0 + b0
        r = R[r_idx]
        x = (e1 @ U) * (r @ V)                            # (B, K*D)
        x = x.reshape(-1, OUT_DIM, K_RANK).sum(-1)        # (B, D)
        x = jnp.sign(x) * jnp.sqrt(jnp.abs(x) + NORM_EPS)
        nrm = jnp.linalg.norm(x, axis=-1, keepdims=True)
        x = x / jnp.maximum(nrm, NORM_EPS)
        x = x * s1 + b1
        return jax.nn.sigmoid(x @ E.T)

    ref = jax.block_until_ready(reference())
    np.testing.assert_allclose(np.asarray(pred), np.asarray(ref),
                               rtol=2e-2, atol=2e-2)
    print("KERNEL_OK")
</pallas_src>

<mosaic_0001>
module attributes {stable_mosaic.version = 11 : i64} {
  func.func @lowfer_kernel(%arg0: i32, %arg1: memref<4x200xf32, #tpu.memory_space<vmem>>, %arg2: memref<4x32xf32, #tpu.memory_space<vmem>>, %arg3: memref<4x200x200xf32, #tpu.memory_space<vmem>>, %arg4: memref<4x32x200xf32, #tpu.memory_space<vmem>>, %arg5: memref<200x128xf32, #tpu.memory_space<vmem>>, %arg6: memref<1x200xf32, #tpu.memory_space<vmem>>, %arg7: memref<1x200xf32, #tpu.memory_space<vmem>>, %arg8: memref<1x200xf32, #tpu.memory_space<vmem>>, %arg9: memref<1x200xf32, #tpu.memory_space<vmem>>, %arg10: memref<4x128xf32, #tpu.memory_space<vmem>>) attributes {dimension_semantics = [#tpu.dimension_semantics<arbitrary>], iteration_bounds = array<i64: 1>, scalar_prefetch = 0 : i64, scratch_operands = 0 : i64, tpu.core_type = #tpu.core_type<tc>, window_params = [{pipeline_mode = #tpu.pipeline_mode<synchronous>, transform_indices = @transform_0, window_bounds = array<i64: 4, 200>}, {pipeline_mode = #tpu.pipeline_mode<synchronous>, transform_indices = @transform_1, window_bounds = array<i64: 4, 32>}, {pipeline_mode = #tpu.pipeline_mode<synchronous>, transform_indices = @transform_2, window_bounds = array<i64: 4, 200, 200>}, {pipeline_mode = #tpu.pipeline_mode<synchronous>, transform_indices = @transform_3, window_bounds = array<i64: 4, 32, 200>}, {pipeline_mode = #tpu.pipeline_mode<synchronous>, transform_indices = @transform_4, window_bounds = array<i64: 200, 128>}, {pipeline_mode = #tpu.pipeline_mode<synchronous>, transform_indices = @transform_5, window_bounds = array<i64: 1, 200>}, {pipeline_mode = #tpu.pipeline_mode<synchronous>, transform_indices = @transform_6, window_bounds = array<i64: 1, 200>}, {pipeline_mode = #tpu.pipeline_mode<synchronous>, transform_indices = @transform_7, window_bounds = array<i64: 1, 200>}, {pipeline_mode = #tpu.pipeline_mode<synchronous>, transform_indices = @transform_8, window_bounds = array<i64: 1, 200>}, {pipeline_mode = #tpu.pipeline_mode<synchronous>, transform_indices = @transform_9, window_bounds = array<i64: 4, 128>}]} {
    %c0 = arith.constant 0 : index
    %c0_0 = arith.constant 0 : index
    %0 = vector.load %arg1[%c0, %c0_0] : memref<4x200xf32, #tpu.memory_space<vmem>>, vector<4x200xf32>
    %c0_1 = arith.constant 0 : index
    %c0_2 = arith.constant 0 : index
    %1 = vector.load %arg6[%c0_1, %c0_2] : memref<1x200xf32, #tpu.memory_space<vmem>>, vector<1x200xf32>
    %2 = vector.broadcast %1 : vector<1x200xf32> to vector<4x200xf32>
    %3 = arith.mulf %0, %2 : vector<4x200xf32>
    %c0_3 = arith.constant 0 : index
    %c0_4 = arith.constant 0 : index
    %4 = vector.load %arg7[%c0_3, %c0_4] : memref<1x200xf32, #tpu.memory_space<vmem>>, vector<1x200xf32>
    %5 = vector.broadcast %4 : vector<1x200xf32> to vector<4x200xf32>
    %6 = arith.addf %3, %5 : vector<4x200xf32>
    %c0_5 = arith.constant 0 : index
    %c0_6 = arith.constant 0 : index
    %7 = vector.load %arg2[%c0_5, %c0_6] : memref<4x32xf32, #tpu.memory_space<vmem>>, vector<4x32xf32>
    %cst = arith.constant 0.000000e+00 : f32
    %8 = vector.broadcast %cst : f32 to vector<4x200xf32>
    %c0_7 = arith.constant 0 : index
    %c0_8 = arith.constant 0 : index
    %c0_9 = arith.constant 0 : index
    %9 = vector.load %arg3[%c0_7, %c0_8, %c0_9] : memref<4x200x200xf32, #tpu.memory_space<vmem>>, vector<1x200x200xf32>
    %10 = vector.shape_cast %9 : vector<1x200x200xf32> to vector<200x200xf32>
    %cst_10 = arith.constant dense<0.000000e+00> : vector<4x200xf32>
    %11 = tpu.matmul %6, %10, %cst_10 {dimension_numbers = #tpu.dot_dimension_numbers<[1], [0], [0], [1], [0, 0, 1, 1], [], []>} : vector<4x200xf32>, vector<200x200xf32>, vector<4x200xf32> -> vector<4x200xf32>
    %c0_11 = arith.constant 0 : index
    %c0_12 = arith.constant 0 : index
    %c0_13 = arith.constant 0 : index
    %12 = vector.load %arg4[%c0_11, %c0_12, %c0_13] : memref<4x32x200xf32, #tpu.memory_space<vmem>>, vector<1x32x200xf32>
    %13 = vector.shape_cast %12 : vector<1x32x200xf32> to vector<32x200xf32>
    %cst_14 = arith.constant dense<0.000000e+00> : vector<4x200xf32>
    %14 = tpu.matmul %7, %13, %cst_14 {dimension_numbers = #tpu.dot_dimension_numbers<[1], [0], [0], [1], [0, 0, 1, 1], [], []>} : vector<4x32xf32>, vector<32x200xf32>, vector<4x200xf32> -> vector<4x200xf32>
    %15 = arith.mulf %11, %14 : vector<4x200xf32>
    %16 = arith.addf %8, %15 : vector<4x200xf32>
    %c1 = arith.constant 1 : index
    %c0_15 = arith.constant 0 : index
    %c0_16 = arith.constant 0 : index
    %17 = vector.load %arg3[%c1, %c0_15, %c0_16] : memref<4x200x200xf32, #tpu.memory_space<vmem>>, vector<1x200x200xf32>
    %18 = vector.shape_cast %17 : vector<1x200x200xf32> to vector<200x200xf32>
    %cst_17 = arith.constant dense<0.000000e+00> : vector<4x200xf32>
    %19 = tpu.matmul %6, %18, %cst_17 {dimension_numbers = #tpu.dot_dimension_numbers<[1], [0], [0], [1], [0, 0, 1, 1], [], []>} : vector<4x200xf32>, vector<200x200xf32>, vector<4x200xf32> -> vector<4x200xf32>
    %c1_18 = arith.constant 1 : index
    %c0_19 = arith.constant 0 : index
    %c0_20 = arith.constant 0 : index
    %20 = vector.load %arg4[%c1_18, %c0_19, %c0_20] : memref<4x32x200xf32, #tpu.memory_space<vmem>>, vector<1x32x200xf32>
    %21 = vector.shape_cast %20 : vector<1x32x200xf32> to vector<32x200xf32>
    %cst_21 = arith.constant dense<0.000000e+00> : vector<4x200xf32>
    %22 = tpu.matmul %7, %21, %cst_21 {dimension_numbers = #tpu.dot_dimension_numbers<[1], [0], [0], [1], [0, 0, 1, 1], [], []>} : vector<4x32xf32>, vector<32x200xf32>, vector<4x200xf32> -> vector<4x200xf32>
    %23 = arith.mulf %19, %22 : vector<4x200xf32>
    %24 = arith.addf %16, %23 : vector<4x200xf32>
    %c2 = arith.constant 2 : index
    %c0_22 = arith.constant 0 : index
    %c0_23 = arith.constant 0 : index
    %25 = vector.load %arg3[%c2, %c0_22, %c0_23] : memref<4x200x200xf32, #tpu.memory_space<vmem>>, vector<1x200x200xf32>
    %26 = vector.shape_cast %25 : vector<1x200x200xf32> to vector<200x200xf32>
    %cst_24 = arith.constant dense<0.000000e+00> : vector<4x200xf32>
    %27 = tpu.matmul %6, %26, %cst_24 {dimension_numbers = #tpu.dot_dimension_numbers<[1], [0], [0], [1], [0, 0, 1, 1], [], []>} : vector<4x200xf32>, vector<200x200xf32>, vector<4x200xf32> -> vector<4x200xf32>
    %c2_25 = arith.constant 2 : index
    %c0_26 = arith.constant 0 : index
    %c0_27 = arith.constant 0 : index
    %28 = vector.load %arg4[%c2_25, %c0_26, %c0_27] : memref<4x32x200xf32, #tpu.memory_space<vmem>>, vector<1x32x200xf32>
    %29 = vector.shape_cast %28 : vector<1x32x200xf32> to vector<32x200xf32>
    %cst_28 = arith.constant dense<0.000000e+00> : vector<4x200xf32>
    %30 = tpu.matmul %7, %29, %cst_28 {dimension_numbers = #tpu.dot_dimension_numbers<[1], [0], [0], [1], [0, 0, 1, 1], [], []>} : vector<4x32xf32>, vector<32x200xf32>, vector<4x200xf32> -> vector<4x200xf32>
    %31 = arith.mulf %27, %30 : vector<4x200xf32>
    %32 = arith.addf %24, %31 : vector<4x200xf32>
    %c3 = arith.constant 3 : index
    %c0_29 = arith.constant 0 : index
    %c0_30 = arith.constant 0 : index
    %33 = vector.load %arg3[%c3, %c0_29, %c0_30] : memref<4x200x200xf32, #tpu.memory_space<vmem>>, vector<1x200x200xf32>
    %34 = vector.shape_cast %33 : vector<1x200x200xf32> to vector<200x200xf32>
    %cst_31 = arith.constant dense<0.000000e+00> : vector<4x200xf32>
    %35 = tpu.matmul %6, %34, %cst_31 {dimension_numbers = #tpu.dot_dimension_numbers<[1], [0], [0], [1], [0, 0, 1, 1], [], []>} : vector<4x200xf32>, vector<200x200xf32>, vector<4x200xf32> -> vector<4x200xf32>
    %c3_32 = arith.constant 3 : index
    %c0_33 = arith.constant 0 : index
    %c0_34 = arith.constant 0 : index
    %36 = vector.load %arg4[%c3_32, %c0_33, %c0_34] : memref<4x32x200xf32, #tpu.memory_space<vmem>>, vector<1x32x200xf32>
    %37 = vector.shape_cast %36 : vector<1x32x200xf32> to vector<32x200xf32>
    %cst_35 = arith.constant dense<0.000000e+00> : vector<4x200xf32>
    %38 = tpu.matmul %7, %37, %cst_35 {dimension_numbers = #tpu.dot_dimension_numbers<[1], [0], [0], [1], [0, 0, 1, 1], [], []>} : vector<4x32xf32>, vector<32x200xf32>, vector<4x200xf32> -> vector<4x200xf32>
    %39 = arith.mulf %35, %38 : vector<4x200xf32>
    %40 = arith.addf %32, %39 : vector<4x200xf32>
    %cst_36 = arith.constant 0.000000e+00 : f32
    %41 = vector.broadcast %cst_36 : f32 to vector<4x200xf32>
    %42 = arith.cmpf ogt, %40, %41 : vector<4x200xf32>
    %cst_37 = arith.constant 0.000000e+00 : f32
    %43 = vector.broadcast %cst_37 : f32 to vector<4x200xf32>
    %44 = arith.cmpf olt, %40, %43 : vector<4x200xf32>
    %cst_38 = arith.constant -1.000000e+00 : f32
    %cst_39 = arith.constant 0.000000e+00 : f32
    %45 = vector.broadcast %cst_38 : f32 to vector<4x200xf32>
    %46 = vector.broadcast %cst_39 : f32 to vector<4x200xf32>
    %47 = arith.select %44, %45, %46 : vector<4x200xi1>, vector<4x200xf32>
    %cst_40 = arith.constant 1.000000e+00 : f32
    %48 = vector.broadcast %cst_40 : f32 to vector<4x200xf32>
    %49 = arith.select %42, %48, %47 : vector<4x200xi1>, vector<4x200xf32>
    %50 = math.absf %40 : vector<4x200xf32>
    %cst_41 = arith.constant 9.99999996E-13 : f32
    %51 = vector.broadcast %cst_41 : f32 to vector<4x200xf32>
    %52 = arith.addf %50, %51 : vector<4x200xf32>
    %53 = math.sqrt %52 : vector<4x200xf32>
    %54 = arith.mulf %49, %53 : vector<4x200xf32>
    %55 = arith.mulf %54, %54 : vector<4x200xf32>
    %cst_42 = arith.constant dense<0.000000e+00> : vector<4xf32>
    %56 = vector.multi_reduction <add>, %55, %cst_42 [1] : vector<4x200xf32> to vector<4xf32>
    %57 = vector.shape_cast %56 : vector<4xf32> to vector<4x1xf32>
    %58 = math.sqrt %57 : vector<4x1xf32>
    %cst_43 = arith.constant 9.99999996E-13 : f32
    %59 = vector.broadcast %cst_43 : f32 to vector<4x1xf32>
    %60 = arith.maximumf %58, %59 : vector<4x1xf32>
    %61 = vector.broadcast %60 : vector<4x1xf32> to vector<4x200xf32>
    %62 = arith.divf %54, %61 : vector<4x200xf32>
    %c0_44 = arith.constant 0 : index
    %c0_45 = arith.constant 0 : index
    %63 = vector.load %arg8[%c0_44, %c0_45] : memref<1x200xf32, #tpu.memory_space<vmem>>, vector<1x200xf32>
    %64 = vector.broadcast %63 : vector<1x200xf32> to vector<4x200xf32>
    %65 = arith.mulf %62, %64 : vector<4x200xf32>
    %c0_46 = arith.constant 0 : index
    %c0_47 = arith.constant 0 : index
    %66 = vector.load %arg9[%c0_46, %c0_47] : memref<1x200xf32, #tpu.memory_space<vmem>>, vector<1x200xf32>
    %67 = vector.broadcast %66 : vector<1x200xf32> to vector<4x200xf32>
    %68 = arith.addf %65, %67 : vector<4x200xf32>
    %c0_48 = arith.constant 0 : index
    %c0_49 = arith.constant 0 : index
    %69 = vector.load %arg5[%c0_48, %c0_49] : memref<200x128xf32, #tpu.memory_space<vmem>>, vector<200x128xf32>
    %cst_50 = arith.constant dense<0.000000e+00> : vector<4x128xf32>
    %70 = tpu.matmul %68, %69, %cst_50 {dimension_numbers = #tpu.dot_dimension_numbers<[1], [0], [0], [1], [0, 0, 1, 1], [], []>} : vector<4x200xf32>, vector<200x128xf32>, vector<4x128xf32> -> vector<4x128xf32>
    %71 = arith.negf %70 : vector<4x128xf32>
    %72 = math.exp %71 : vector<4x128xf32>
    %cst_51 = arith.constant 1.000000e+00 : f32
    %73 = vector.broadcast %cst_51 : f32 to vector<4x128xf32>
    %74 = arith.addf %73, %72 : vector<4x128xf32>
    %75 = arith.divf %73, %74 : vector<4x128xf32>
    %c0_52 = arith.constant 0 : index
    %c0_53 = arith.constant 0 : index
    %76 = vector.load %arg10[%c0_52, %c0_53] : memref<4x128xf32, #tpu.memory_space<vmem>>, vector<4x128xf32>
    tpu.vector_store %arg10[%c0_52, %c0_53], %75 {strides = array<i32>} : memref<4x128xf32, #tpu.memory_space<vmem>>, vector<4x128xf32>,
    return
  }
  func.func @transform_0(%arg0: i32) -> (i32, i32) {
    %c0_i32 = arith.constant 0 : i32
    %c0_i32_0 = arith.constant 0 : i32
    %c0_i32_1 = arith.constant 0 : i32
    return %c0_i32, %c0_i32_0 : i32, i32
  }
  func.func @transform_1(%arg0: i32) -> (i32, i32) {
    %c0_i32 = arith.constant 0 : i32
    %c0_i32_0 = arith.constant 0 : i32
    %c0_i32_1 = arith.constant 0 : i32
    return %c0_i32, %c0_i32_0 : i32, i32
  }
  func.func @transform_2(%arg0: i32) -> (i32, i32, i32) {
    %c0_i32 = arith.constant 0 : i32
    %c0_i32_0 = arith.constant 0 : i32
    %c0_i32_1 = arith.constant 0 : i32
    %c0_i32_2 = arith.constant 0 : i32
    return %c0_i32, %c0_i32_0, %c0_i32_1 : i32, i32, i32
  }
  func.func @transform_3(%arg0: i32) -> (i32, i32, i32) {
    %c0_i32 = arith.constant 0 : i32
    %c0_i32_0 = arith.constant 0 : i32
    %c0_i32_1 = arith.constant 0 : i32
    %c0_i32_2 = arith.constant 0 : i32
    return %c0_i32, %c0_i32_0, %c0_i32_1 : i32, i32, i32
  }
  func.func @transform_4(%arg0: i32) -> (i32, i32) {
    %c0_i32 = arith.constant 0 : i32
    %c0_i32_0 = arith.constant 0 : i32
    %c0_i32_1 = arith.constant 0 : i32
    return %c0_i32, %c0_i32_0 : i32, i32
  }
  func.func @transform_5(%arg0: i32) -> (i32, i32) {
    %c0_i32 = arith.constant 0 : i32
    %c0_i32_0 = arith.constant 0 : i32
    %c0_i32_1 = arith.constant 0 : i32
    return %c0_i32, %c0_i32_0 : i32, i32
  }
  func.func @transform_6(%arg0: i32) -> (i32, i32) {
    %c0_i32 = arith.constant 0 : i32
    %c0_i32_0 = arith.constant 0 : i32
    %c0_i32_1 = arith.constant 0 : i32
    return %c0_i32, %c0_i32_0 : i32, i32
  }
  func.func @transform_7(%arg0: i32) -> (i32, i32) {
    %c0_i32 = arith.constant 0 : i32
    %c0_i32_0 = arith.constant 0 : i32
    %c0_i32_1 = arith.constant 0 : i32
    return %c0_i32, %c0_i32_0 : i32, i32
  }
  func.func @transform_8(%arg0: i32) -> (i32, i32) {
    %c0_i32 = arith.constant 0 : i32
    %c0_i32_0 = arith.constant 0 : i32
    %c0_i32_1 = arith.constant 0 : i32
    return %c0_i32, %c0_i32_0 : i32, i32
  }
  func.func @transform_9(%arg0: i32) -> (i32, i32) {
    %c0_i32 = arith.constant 0 : i32
    %c0_i32_0 = arith.constant 0 : i32
    %c0_i32_1 = arith.constant 0 : i32
    return %c0_i32, %c0_i32_0 : i32, i32
  }
}

</mosaic_0001>

<bundles_post_ra>
// kernel: tpu_custom_call.1
= control target key start
LH: loop header
LB: loop body
LE: loop exit
PB: predicated region body
PF: predicated region fallthrough
CT: control target
= control target key end

     0   :  { %14 = vsyncpa [#allocation3], 0  ;;  %s1488_s0 = inlined_call_operand.hbm [shape: f32[4,200], index: 0, kind: input, shape index: {}]   ;;  %s1489_s1 = inlined_call_operand.hbm [shape: f32[4,32], index: 1, kind: input, shape index: {}]   ;;  %s1490_s2 = inlined_call_operand.hbm [shape: f32[4,200,200], index: 2, kind: input, shape index: {}]   ;;  %s1491_s3 = inlined_call_operand.hbm [shape: f32[4,32,200], index: 3, kind: input, shape index: {}]   ;;  %s1492_s4 = inlined_call_operand.hbm [shape: f32[200,128], index: 4, kind: input, shape index: {}]   ;;  %s1493_s5 = inlined_call_operand.vmem [shape: f32[1,200], index: 5, kind: input, shape index: {}]   ;;  %s1494_s6 = inlined_call_operand.vmem [shape: f32[1,200], index: 6, kind: input, shape index: {}]   ;;  %s1495_s7 = inlined_call_operand.vmem [shape: f32[1,200], index: 7, kind: input, shape index: {}]   ;;  %s1496_s8 = inlined_call_operand.vmem [shape: f32[1,200], index: 8, kind: input, shape index: {}]   ;;  %s1497_s9 = inlined_call_operand.hbm [shape: f32[4,128], index: 9, kind: output, shape index: {}]  }
   0x1   :  { %15 = vsyncpa [#allocation6], 0 }
   0x2   :  { %16 = vsyncpa [#allocation9], 0 }
   0x3   :  { %17 = vsyncpa [#allocation4], 0  ;;  %s1315_s30 = smov [#allocation5]  }
   0x4   :  { %s34_s10 = sshll.u32 %s1315_s30, 4  ;;  %s35_s10 = int_to_ptr.vmem [resolvable:$true] %s34_s10 }
   0x5   :  { %s1195_s11 = scalar_lea.vmem %s35_s10, 64  ;;  %p1200_p1 = scmp.lt.s32.totalorder %s35_s10, %s35_s10 }
   0x6   :  { %p1196_p0 = scmp.ne.s32.totalorder %s35_s10, %s1195_s11  ;;  %p1201_p2 = scmp.lt.s32.totalorder %s1195_s11, %s1195_s11 }
   0x8   :  { %p1202_p3 = por %p1201_p2, %p1200_p1 }
   0xa   :  { %p1203_p4 = pnand %p1202_p3, %p1196_p0 }
   0xc   :  { %1206 = shalt.err (!%p1203_p4)
}
   0xd   :  { %37 = dma.hbm_to_vmem [thread:$0]  %s1489_s1, 64, %s35_s10, [#allocation6]  }
   0xe   :  { %s1316_s14 = smov [#allocation8]   ;;  %s1317_s16 = smov [#allocation2]  }
   0xf   :  { %s55_s15 = sshll.u32 %s1316_s14, 4  ;;  %s24_s17 = sshll.u32 %s1317_s16, 4  ;;  %s56_s15 = int_to_ptr.vmem [resolvable:$true] %s55_s15  ;;  %s25_s17 = int_to_ptr.vmem [resolvable:$true] %s24_s17 }
  0x10   :  { %s1215_s18 = scalar_lea.vmem %s56_s15, 4096  ;;  %p1220_p6 = scmp.lt.s32.totalorder %s56_s15, %s56_s15 }
  0x11   :  { %p1216_p5 = scmp.ne.s32.totalorder %s56_s15, %s1215_s18  ;;  %p1221_p7 = scmp.lt.s32.totalorder %s1215_s18, %s1215_s18 }
  0x13   :  { %p1222_p8 = por %p1221_p7, %p1220_p6 }
  0x15   :  { %p1223_p9 = pnand %p1222_p8, %p1216_p5 }
  0x17   :  { %1226 = shalt.err (!%p1223_p9)
}
  0x18   :  { %s1318_s19 = smov 256   ;;  %s1319_s20 = smov 16  }
  0x19   :  { %61 = dma.hbm_to_vmem [thread:$0]  %s1491_s3, 4096, %s56_s15, [#allocation9], %s1318_s19, %s1318_s19, %s1319_s20  }
  0x1a   :  { %s1235_s1 = scalar_lea.vmem %s25_s17, 128  ;;  %p1240_p11 = scmp.lt.s32.totalorder %s25_s17, %s25_s17 }
  0x1b   :  { %p1236_p10 = scmp.ne.s32.totalorder %s25_s17, %s1235_s1  ;;  %p1241_p12 = scmp.lt.s32.totalorder %s1235_s1, %s1235_s1 }
  0x1d   :  { %p1242_p13 = por %p1241_p12, %p1240_p11 }
  0x1f   :  { %p1243_p0 = pnand %p1242_p13, %p1236_p10 }
  0x21   :  { %1246 = shalt.err (!%p1243_p0)
}
  0x22   :  { %27 = dma.hbm_to_vmem [thread:$0]  %s1488_s0, 128, %s25_s17, [#allocation3]  }
  0x23   :  { %s1320_s25 = smov [#allocation7]   ;;  %s1321_s27 = smov [#allocation10]  }
  0x24   :  { %s43_s26 = sshll.u32 %s1320_s25, 4  ;;  %s67_s28 = sshll.u32 %s1321_s27, 4  ;;  %s44_s26 = int_to_ptr.vmem [resolvable:$true] %s43_s26  ;;  %s68_s28 = int_to_ptr.vmem [resolvable:$true] %s67_s28 }
  0x25   :  { %s1255_s29 = scalar_lea.vmem %s44_s26, 25600  ;;  %p1260_p2 = scmp.lt.s32.totalorder %s44_s26, %s44_s26 }
  0x26   :  { %p1256_p1 = scmp.ne.s32.totalorder %s44_s26, %s1255_s29  ;;  %p1261_p3 = scmp.lt.s32.totalorder %s1255_s29, %s1255_s29 }
  0x28   :  { %p1262_p4 = por %p1261_p3, %p1260_p2 }
  0x2a   :  { %p1263_p5 = pnand %p1262_p4, %p1256_p1 }
  0x2c   :  { %1266 = shalt.err (!%p1263_p5)
}
  0x2d   :  { %49 = dma.hbm_to_vmem [thread:$0]  %s1490_s2, 25600, %s44_s26, [#allocation6], %s1318_s19, %s1318_s19, %s1319_s20  }
  0x2e   :  { %s1275_s10 = scalar_lea.vmem %s68_s28, 3200  ;;  %p1280_p7 = scmp.lt.s32.totalorder %s68_s28, %s68_s28 }
  0x2f   :  { %p1276_p6 = scmp.ne.s32.totalorder %s68_s28, %s1275_s10  ;;  %p1281_p8 = scmp.lt.s32.totalorder %s1275_s10, %s1275_s10 }
  0x31   :  { %p1282_p9 = por %p1281_p8, %p1280_p7 }
  0x33   :  { %p1283_p10 = pnand %p1282_p9, %p1276_p6 }
  0x35   :  { %1286 = shalt.err (!%p1283_p10)
}
  0x36   :  { %s1322_s0 = smov 128   ;;  %s1323_s11 = smov 8  }
  0x37   :  { %73 = dma.hbm_to_vmem [thread:$0]  %s1492_s4, 3200, %s68_s28, [#allocation9], %s1322_s0, %s1322_s0, %s1323_s11  }
  0x38   :  { %1307 = dma.done.wait [#allocation3], 128  }
  0x39   :  { %1308 = vsyncadd [#allocation3], 4294967168 }
  0x3a   :  { %1309 = dma.done.wait [#allocation6], 25664  }
  0x3b   :  { %1310 = vsyncadd [#allocation6], 4294941632 }
  0x3c   :  { %1311 = dma.done.wait [#allocation9], 7296  }
  0x3d   :  { %1312 = vsyncadd [#allocation9], 4294960000  ;;  %v1324_v0 = vmov 0.0   ;;  %v156_v1 = vld [vmem:[#allocation7 + $0xf8] sm:$0xff]  ;;  %v155_v3 = vld [vmem:[#allocation7 + $0xf0] sm:$0xff]  ;;  %vm259_vm0 = vcmask 261120   ;;  %v100_v51 = vlaneseq }
  0x3e   :  { %327 = vmatprep.mubr.f32.mxu1 %v1324_v0  ;;  %v258_v2 = vld [vmem:[#allocation8 + $0x38] sm:$0xff]  ;;  %180 = vmatprep.subr.mxu0 %v156_v1  ;;  %v257_v4 = vld [vmem:[#allocation8 + $0x30] sm:$0xff]  ;;  %v154_v5 = vld [vmem:[#allocation7 + $0xe8] sm:$0xff]  ;;  %vm177_vm1 = vcmask 588800   ;;  %vm986_vm10 = vcmask 1043456   ;;  %vm988_vm11 = vcmask 584704  }
  0x3f   :  { %287 = vmatprep.subr.mxu1 %v258_v2  ;;  %v256_v6 = vld [vmem:[#allocation8 + $0x28] sm:$0xff]  ;;  %181 = vmatpush1.msra.mxu0 %v155_v3  ;;  %v153_v7 = vld [vmem:[#allocation7 + $0xe0] sm:$0xff]  ;;  %v152_v9 = vld [vmem:[#allocation7 + $0xd8] sm:$0xff]  ;;  %v101_v60 = vshrl.u32 %v100_v51, 7 }
  0x40   :  { %288 = vmatpush1.msra.mxu1 %v257_v4  ;;  %v255_v8 = vld [vmem:[#allocation8 + $0x20] sm:$0xff]  ;;  %182 = vmatprep.subr.mxu0 %v154_v5  ;;  %v254_v10 = vld [vmem:[#allocation8 + $0x18] sm:$0xff]  ;;  %v151_v11 = vld [vmem:[#allocation7 + $0xd0] sm:$0xff] }
  0x41   :  { %289 = vmatprep.subr.mxu1 %v256_v6  ;;  %v253_v12 = vld [vmem:[#allocation8 + $0x10] sm:$0xff]  ;;  %183 = vmatpush1.msra.mxu0 %v153_v7  ;;  %v150_v13 = vld [vmem:[#allocation7 + $0xc8] sm:$0xff]  ;;  %v149_v15 = vld [vmem:[#allocation7 + $0xc0] sm:$0xff]  ;;  %v1396_v6 = vsub.s32 0, %v101_v60  ;;  %v1398_v7 = vsub.s32 1, %v101_v60 }
  0x42   :  { %290 = vmatpush1.msra.mxu1 %v255_v8  ;;  %v252_v14 = vld [vmem:[#allocation8 + $0x8] sm:$0xff]  ;;  %184 = vmatprep.subr.mxu0 %v152_v9  ;;  %v251_v16 = vld [vmem:[#allocation8] sm:$0xff]  ;;  %v148_v17 = vld [vmem:[#allocation7 + $0xb8] sm:$0xff] }
  0x43   :  { %291 = vmatprep.subr.mxu1 %v254_v10  ;;  %185 = vmatpush1.msra.mxu0 %v151_v11  ;;  %v1392_v18 = vld [vmem:[#allocation5] sm:$0xf]  ;;  %v370_v19 = vld [vmem:[#allocation7 + $0x288] sm:$0xff]  ;;  %v147_v20 = vld [vmem:[#allocation7 + $0xb0] sm:$0xff] }
  0x44   :  { %292 = vmatpush1.msra.mxu1 %v253_v12  ;;  %186 = vmatprep.subr.mxu0 %v150_v13  ;;  %v369_v21 = vld [vmem:[#allocation7 + $0x280] sm:$0xff]  ;;  %v146_v22 = vld [vmem:[#allocation7 + $0xa8] sm:$0xff]  ;;  %v368_v23 = vld [vmem:[#allocation7 + $0x278] sm:$0xff] }
  0x45   :  { %293 = vmatprep.subr.mxu1 %v252_v14  ;;  %187 = vmatpush1.msra.mxu0 %v149_v15  ;;  %v145_v24 = vld [vmem:[#allocation7 + $0xa0] sm:$0xff]  ;;  %v367_v25 = vld [vmem:[#allocation7 + $0x270] sm:$0xff]  ;;  %v144_v26 = vld [vmem:[#allocation7 + $0x98] sm:$0xff] }
  0x46   :  { %294 = vmatpush1.msra.mxu1 %v251_v16  ;;  %188 = vmatprep.subr.mxu0 %v148_v17  ;;  %v366_v27 = vld [vmem:[#allocation7 + $0x268] sm:$0xff]  ;;  %v143_v28 = vld [vmem:[#allocation7 + $0x90] sm:$0xff]  ;;  %v365_v29 = vld [vmem:[#allocation7 + $0x260] sm:$0xff] }
  0x47   :  { %1155 = vmatmul.mubr.msk.f32.vlgmr.msra.gmra.mxu1 %vm259_vm0, %v1392_v18  ;;  %389 = vmatprep.subr.mxu1 %v370_v19  ;;  %v142_v30 = vld [vmem:[#allocation7 + $0x88] sm:$0xff]  ;;  %v364_v31 = vld [vmem:[#allocation7 + $0x258] sm:$0xff]  ;;  %v141_v32 = vld [vmem:[#allocation7 + $0x80] sm:$0xff] }
  0x48   :  { %189 = vmatpush1.msra.mxu0 %v147_v20  ;;  %390 = vmatpush1.msra.mxu1 %v369_v21  ;;  %v363_v33 = vld [vmem:[#allocation7 + $0x250] sm:$0xff]  ;;  %v140_v34 = vld [vmem:[#allocation7 + $0x78] sm:$0xff]  ;;  %v362_v35 = vld [vmem:[#allocation7 + $0x248] sm:$0xff] }
  0x49   :  { %190 = vmatprep.subr.mxu0 %v146_v22  ;;  %391 = vmatprep.subr.mxu1 %v368_v23  ;;  %v139_v36 = vld [vmem:[#allocation7 + $0x70] sm:$0xff]  ;;  %v361_v37 = vld [vmem:[#allocation7 + $0x240] sm:$0xff]  ;;  %v138_v38 = vld [vmem:[#allocation7 + $0x68] sm:$0xff] }
  0x4a   :  { %191 = vmatpush1.msra.mxu0 %v145_v24  ;;  %392 = vmatpush1.msra.mxu1 %v367_v25  ;;  %v360_v39 = vld [vmem:[#allocation7 + $0x238] sm:$0xff]  ;;  %v137_v40 = vld [vmem:[#allocation7 + $0x60] sm:$0xff]  ;;  %v359_v41 = vld [vmem:[#allocation7 + $0x230] sm:$0xff] }
  0x4b   :  { %192 = vmatprep.subr.mxu0 %v144_v26  ;;  %393 = vmatprep.subr.mxu1 %v366_v27  ;;  %v136_v42 = vld [vmem:[#allocation7 + $0x58] sm:$0xff]  ;;  %v358_v43 = vld [vmem:[#allocation7 + $0x228] sm:$0xff]  ;;  %v135_v44 = vld [vmem:[#allocation7 + $0x50] sm:$0xff] }
  0x4c   :  { %193 = vmatpush1.msra.mxu0 %v143_v28  ;;  %394 = vmatpush1.msra.mxu1 %v365_v29  ;;  %v357_v45 = vld [vmem:[#allocation7 + $0x220] sm:$0xff]  ;;  %v134_v46 = vld [vmem:[#allocation7 + $0x48] sm:$0xff]  ;;  %v356_v47 = vld [vmem:[#allocation7 + $0x218] sm:$0xff] }
  0x4d   :  { %194 = vmatprep.subr.mxu0 %v142_v30  ;;  %395 = vmatprep.subr.mxu1 %v364_v31  ;;  %v133_v48 = vld [vmem:[#allocation7 + $0x40] sm:$0xff]  ;;  %v355_v49 = vld [vmem:[#allocation7 + $0x210] sm:$0xff]  ;;  %v132_v50 = vld [vmem:[#allocation7 + $0x38] sm:$0xff] }
  0x4e   :  { %195 = vmatpush1.msra.mxu0 %v141_v32  ;;  %396 = vmatpush1.msra.mxu1 %v363_v33  ;;  %v354_v52 = vld [vmem:[#allocation7 + $0x208] sm:$0xff]  ;;  %v131_v53 = vld [vmem:[#allocation7 + $0x30] sm:$0xff]  ;;  %v353_v54 = vld [vmem:[#allocation7 + $0x200] sm:$0xff] }
  0x4f   :  { %196 = vmatprep.subr.mxu0 %v140_v34  ;;  %397 = vmatprep.subr.mxu1 %v362_v35  ;;  %v130_v55 = vld [vmem:[#allocation7 + $0x28] sm:$0xff]  ;;  %v352_v56 = vld [vmem:[#allocation7 + $0x1f8] sm:$0xff]  ;;  %v129_v57 = vld [vmem:[#allocation7 + $0x20] sm:$0xff] }
  0x50   :  { %197 = vmatpush1.msra.mxu0 %v139_v36  ;;  %398 = vmatpush1.msra.mxu1 %v361_v37  ;;  %v351_v58 = vld [vmem:[#allocation7 + $0x1f0] sm:$0xff]  ;;  %v128_v59 = vld [vmem:[#allocation7 + $0x18] sm:$0xff]  ;;  %v350_v61 = vld [vmem:[#allocation7 + $0x1e8] sm:$0xff] }
  0x51   :  { %198 = vmatprep.subr.mxu0 %v138_v38  ;;  %399 = vmatprep.subr.mxu1 %v360_v39  ;;  %v127_v62 = vld [vmem:[#allocation7 + $0x10] sm:$0xff]  ;;  %v349_v63 = vld [vmem:[#allocation7 + $0x1e0] sm:$0xff]  ;;  %v126_v1 = vld [vmem:[#allocation7 + $0x8] sm:$0xff] }
  0x52   :  { %199 = vmatpush1.msra.mxu0 %v137_v40  ;;  %400 = vmatpush1.msra.mxu1 %v359_v41  ;;  %v348_v2 = vld [vmem:[#allocation7 + $0x1d8] sm:$0xff]  ;;  %v125_v3 = vld [vmem:[#allocation7] sm:$0xff]  ;;  %v347_v4 = vld [vmem:[#allocation7 + $0x1d0] sm:$0xff] }
  0x53   :  { %200 = vmatprep.subr.mxu0 %v136_v42  ;;  %401 = vmatprep.subr.mxu1 %v358_v43  ;;  %v174_v5 = vld [vmem:[#allocation7 + $0x188] sm:$0xff]  ;;  %v173_v9 = vld [vmem:[#allocation7 + $0x180] sm:$0xff]  ;;  %v172_v11 = vld [vmem:[#allocation7 + $0x178] sm:$0xff] }
  0x54   :  { %201 = vmatpush1.msra.mxu0 %v135_v44  ;;  %402 = vmatpush1.msra.mxu1 %v357_v45  ;;  %v346_v8 = vld [vmem:[#allocation7 + $0x1c8] sm:$0xff]  ;;  %v345_v10 = vld [vmem:[#allocation7 + $0x1c0] sm:$0xff]  ;;  %v344_v12 = vld [vmem:[#allocation7 + $0x1b8] sm:$0xff] }
  0x55   :  { %202 = vmatprep.subr.mxu0 %v134_v46  ;;  %403 = vmatprep.subr.mxu1 %v356_v47  ;;  %v171_v13 = vld [vmem:[#allocation7 + $0x170] sm:$0xff]  ;;  %v170_v16 = vld [vmem:[#allocation7 + $0x168] sm:$0xff]  ;;  %v169_v22 = vld [vmem:[#allocation7 + $0x160] sm:$0xff] }
  0x56   :  { %203 = vmatpush1.msra.mxu0 %v133_v48  ;;  %404 = vmatpush1.msra.mxu1 %v355_v49  ;;  %v98_v14 = vld [vmem:[%s1493_s5] sm:$0x3]  ;;  %v342_v21 = vld [vmem:[#allocation7 + $0x1a8] sm:$0xff]  ;;  %v341_v25 = vld [vmem:[#allocation7 + $0x1a0] sm:$0xff] }
  0x57   :  { %204 = vmatprep.subr.mxu0 %v132_v50  ;;  %405 = vmatprep.subr.mxu1 %v354_v52  ;;  %v343_v15 = vld [vmem:[#allocation7 + $0x1b0] sm:$0xff]  ;;  %v103_v17 = vrot.slane %v98_v14, %v1396_v6  ;;  %v107_v19 = vrot.slane %v98_v14, %v1398_v7  ;;  %v168_v26 = vld [vmem:[#allocation7 + $0x158] sm:$0xff]  ;;  %v166_v32 = vld [vmem:[#allocation7 + $0x148] sm:$0xff] }
  0x58   :  { %205 = vmatpush1.msra.mxu0 %v131_v53  ;;  %406 = vmatpush1.msra.mxu1 %v353_v54  ;;  %v111_v20 = vld [vmem:[%s1494_s6] sm:$0x3]  ;;  %v340_v29 = vld [vmem:[#allocation7 + $0x198] sm:$0xff]  ;;  %v165_v34 = vld [vmem:[#allocation7 + $0x140] sm:$0xff] }
  0x59   :  { %206 = vmatprep.subr.mxu0 %v130_v55  ;;  %407 = vmatprep.subr.mxu1 %v352_v56  ;;  %v116_v23 = vrot.slane %v111_v20, %v1396_v6  ;;  %v120_v24 = vrot.slane %v111_v20, %v1398_v7  ;;  %v97_v27 = vld [vmem:[#allocation2] sm:$0xff]  ;;  %v108_v28 = vcombine.low %v103_v17, %v107_v19  ;;  %v386_v39 = vld [vmem:[#allocation7 + $0x308] sm:$0xff]  ;;  %v385_v41 = vld [vmem:[#allocation7 + $0x300] sm:$0xff] }
  0x5a   :  { %207 = vmatpush1.msra.mxu0 %v129_v57  ;;  %408 = vmatpush1.msra.mxu1 %v351_v58  ;;  %v167_v30 = vld [vmem:[#allocation7 + $0x150] sm:$0xff]  ;;  %v388_v33 = vld [vmem:[#allocation7 + $0x318] sm:$0xff]  ;;  %v162_v42 = vld [vmem:[#allocation7 + $0x128] sm:$0xff] }
  0x5b   :  { %208 = vmatprep.subr.mxu0 %v128_v59  ;;  %409 = vmatprep.subr.mxu1 %v350_v61  ;;  %v339_v31 = vld [vmem:[#allocation7 + $0x190] sm:$0xff]  ;;  %v110_v35 = vmul.f32 %v108_v28, %v97_v27  ;;  %v121_v36 = vcombine.low %v116_v23, %v120_v24  ;;  %v164_v38 = vld [vmem:[#allocation7 + $0x138] sm:$0xff]  ;;  %v161_v44 = vld [vmem:[#allocation7 + $0x120] sm:$0xff] }
  0x5c   :  { %209 = vmatpush1.msra.mxu0 %v127_v62  ;;  %410 = vmatpush1.msra.mxu1 %v349_v63  ;;  %v387_v37 = vld [vmem:[#allocation7 + $0x310] sm:$0xff]  ;;  %v384_v43 = vld [vmem:[#allocation7 + $0x2f8] sm:$0xff]  ;;  %v382_v48 = vld [vmem:[#allocation7 + $0x2e8] sm:$0xff] }
  0x5d   :  { %210 = vmatprep.subr.mxu0 %v126_v1  ;;  %411 = vmatprep.subr.mxu1 %v348_v2  ;;  %v163_v40 = vld [vmem:[#allocation7 + $0x130] sm:$0xff]  ;;  %v1410_v45 = vadd.f32 %v121_v36, %v110_v35  ;;  %v160_v47 = vld [vmem:[#allocation7 + $0x118] sm:$0xff]  ;;  %v381_v50 = vld [vmem:[#allocation7 + $0x2e0] sm:$0xff] }
  0x5e   :  { %211 = vmatpush1.msra.mxu0 %v125_v3  ;;  %412 = vmatpush1.msra.mxu1 %v347_v4  ;;  %v383_v46 = vld [vmem:[#allocation7 + $0x2f0] sm:$0xff]  ;;  %v158_v51 = vld [vmem:[#allocation7 + $0x108] sm:$0xff]  ;;  %v380_v52 = vld [vmem:[#allocation7 + $0x2d8] sm:$0xff] }
  0x5f   :  { %226 = vmatprep.subr.mxu0 %v174_v5  ;;  %413 = vmatprep.subr.mxu1 %v346_v8  ;;  %v159_v49 = vld [vmem:[#allocation7 + $0x110] sm:$0xff]  ;;  %v157_v53 = vld [vmem:[#allocation7 + $0x100] sm:$0xff]  ;;  %v1414_v54 = vcombine.high %v1410_v45, %v1410_v45  ;;  %v378_v56 = vld [vmem:[#allocation7 + $0x2c8] sm:$0xff] }
  0x60   :  { %227 = vmatpush2.msra.mxu0 %v173_v9  ;;  %414 = vmatpush1.msra.mxu1 %v345_v10  ;;  %v379_v55 = vld [vmem:[#allocation7 + $0x2d0] sm:$0xff]  ;;  %v576_v57 = vld [vmem:[#allocation7 + $0x418] sm:$0xff]  ;;  %v377_v58 = vld [vmem:[#allocation7 + $0x2c0] sm:$0xff] }
  0x61   :  { %228 = vmatprep.subr.mxu0 %v172_v11  ;;  %415 = vmatprep.subr.mxu1 %v344_v12  ;;  %v575_v59 = vld [vmem:[#allocation7 + $0x410] sm:$0xff]  ;;  %v376_v60 = vld [vmem:[#allocation7 + $0x2b8] sm:$0xff]  ;;  %v574_v61 = vld [vmem:[#allocation7 + $0x408] sm:$0xff] }
  0x62   :  { %229 = vmatpush2.msra.mxu0 %v171_v13  ;;  %416 = vmatpush1.msra.mxu1 %v343_v15  ;;  %v375_v62 = vld [vmem:[#allocation7 + $0x2b0] sm:$0xff]  ;;  %v573_v63 = vld [vmem:[#allocation7 + $0x400] sm:$0xff]  ;;  %v374_v1 = vld [vmem:[#allocation7 + $0x2a8] sm:$0xff] }
  0x63   :  { %230 = vmatprep.subr.mxu0 %v170_v16  ;;  %417 = vmatprep.subr.mxu1 %v342_v21  ;;  %v572_v2 = vld [vmem:[#allocation7 + $0x3f8] sm:$0xff]  ;;  %v373_v3 = vld [vmem:[#allocation7 + $0x2a0] sm:$0xff]  ;;  %v571_v4 = vld [vmem:[#allocation7 + $0x3f0] sm:$0xff] }
  0x64   :  { %231 = vmatpush2.msra.mxu0 %v169_v22  ;;  %418 = vmatpush1.msra.mxu1 %v341_v25  ;;  %v372_v5 = vld [vmem:[#allocation7 + $0x298] sm:$0xff]  ;;  %v570_v8 = vld [vmem:[#allocation7 + $0x3e8] sm:$0xff]  ;;  %v371_v9 = vld [vmem:[#allocation7 + $0x290] sm:$0xff] }
  0x65   :  { %232 = vmatprep.subr.mxu0 %v168_v26  ;;  %419 = vmatprep.subr.mxu1 %v340_v29  ;;  %v569_v10 = vld [vmem:[#allocation7 + $0x3e0] sm:$0xff]  ;;  %v468_v11 = vld [vmem:[#allocation8 + $0x78] sm:$0xff]  ;;  %v467_v13 = vld [vmem:[#allocation8 + $0x70] sm:$0xff] }
  0x66   :  { %233 = vmatpush2.msra.mxu0 %v167_v30  ;;  %420 = vmatpush1.msra.mxu1 %v339_v31  ;;  %v568_v12 = vld [vmem:[#allocation7 + $0x3d8] sm:$0xff]  ;;  %v567_v14 = vld [vmem:[#allocation7 + $0x3d0] sm:$0xff]  ;;  %v466_v15 = vld [vmem:[#allocation8 + $0x68] sm:$0xff] }
  0x67   :  { %234 = vmatprep.subr.mxu0 %v166_v32  ;;  %435 = vmatprep.subr.mxu1 %v388_v33  ;;  %v566_v16 = vld [vmem:[#allocation7 + $0x3c8] sm:$0xff]  ;;  %v465_v17 = vld [vmem:[#allocation8 + $0x60] sm:$0xff]  ;;  %v464_v20 = vld [vmem:[#allocation8 + $0x58] sm:$0xff] }
  0x68   :  { %235 = vmatpush2.msra.mxu0 %v165_v34  ;;  %436 = vmatpush2.msra.mxu1 %v387_v37  ;;  %v565_v19 = vld [vmem:[#allocation7 + $0x3c0] sm:$0xff]  ;;  %v564_v21 = vld [vmem:[#allocation7 + $0x3b8] sm:$0xff]  ;;  %v463_v22 = vld [vmem:[#allocation8 + $0x50] sm:$0xff] }
  0x69   :  { %236 = vmatprep.subr.mxu0 %v164_v38  ;;  %437 = vmatprep.subr.mxu1 %v386_v39  ;;  %v563_v23 = vld [vmem:[#allocation7 + $0x3b0] sm:$0xff]  ;;  %v462_v24 = vld [vmem:[#allocation8 + $0x48] sm:$0xff]  ;;  %v461_v26 = vld [vmem:[#allocation8 + $0x40] sm:$0xff] }
  0x6a   :  { %237 = vmatpush2.msra.mxu0 %v163_v40  ;;  %438 = vmatpush2.msra.mxu1 %v385_v41  ;;  %v562_v25 = vld [vmem:[#allocation7 + $0x3a8] sm:$0xff]  ;;  %v561_v27 = vld [vmem:[#allocation7 + $0x3a0] sm:$0xff]  ;;  %v560_v28 = vld [vmem:[#allocation7 + $0x398] sm:$0xff] }
  0x6b   :  { %238 = vmatprep.subr.mxu0 %v162_v42  ;;  %439 = vmatprep.subr.mxu1 %v384_v43  ;;  %v674_v29 = vld [vmem:[#allocation8 + $0xb8] sm:$0xff]  ;;  %v559_v30 = vld [vmem:[#allocation7 + $0x390] sm:$0xff]  ;;  %v558_v32 = vld [vmem:[#allocation7 + $0x388] sm:$0xff] }
  0x6c   :  { %239 = vmatpush2.msra.mxu0 %v161_v44  ;;  %440 = vmatpush2.msra.mxu1 %v383_v46  ;;  %v673_v31 = vld [vmem:[#allocation8 + $0xb0] sm:$0xff]  ;;  %v672_v33 = vld [vmem:[#allocation8 + $0xa8] sm:$0xff]  ;;  %v557_v34 = vld [vmem:[#allocation7 + $0x380] sm:$0xff] }
  0x6d   :  { %240 = vmatprep.subr.mxu0 %v160_v47  ;;  %441 = vmatprep.subr.mxu1 %v382_v48  ;;  %v671_v35 = vld [vmem:[#allocation8 + $0xa0] sm:$0xff]  ;;  %v556_v36 = vld [vmem:[#allocation7 + $0x378] sm:$0xff]  ;;  %v555_v38 = vld [vmem:[#allocation7 + $0x370] sm:$0xff] }
  0x6e   :  { %241 = vmatpush2.msra.mxu0 %v159_v49  ;;  %442 = vmatpush2.msra.mxu1 %v381_v50  ;;  %v670_v37 = vld [vmem:[#allocation8 + $0x98] sm:$0xff]  ;;  %v669_v39 = vld [vmem:[#allocation8 + $0x90] sm:$0xff]  ;;  %v554_v40 = vld [vmem:[#allocation7 + $0x368] sm:$0xff] }
  0x6f   :  { %242 = vmatprep.subr.mxu0 %v158_v51  ;;  %443 = vmatprep.subr.mxu1 %v380_v52  ;;  %v668_v41 = vld [vmem:[#allocation8 + $0x88] sm:$0xff]  ;;  %v553_v42 = vld [vmem:[#allocation7 + $0x360] sm:$0xff]  ;;  %v552_v44 = vld [vmem:[#allocation7 + $0x358] sm:$0xff] }
  0x70   :  { %243 = vmatpush2.msra.mxu0 %v157_v53  ;;  %1154 = vmatprep.mubr.msk.f32.mxu0 %vm177_vm1, %v1414_v54  ;;  %v667_v43 = vld [vmem:[#allocation8 + $0x80] sm:$0xff]  ;;  %v782_v46 = vld [vmem:[#allocation7 + $0x5a8] sm:$0xff]  ;;  %v551_v47 = vld [vmem:[#allocation7 + $0x350] sm:$0xff] }
  0x71   :  { %444 = vmatpush2.msra.mxu1 %v379_v55  ;;  %245 = vmatmul.mubr.f32.vlgmr.msra.gmra.mxu0 %v1410_v45  ;;  %v781_v48 = vld [vmem:[#allocation7 + $0x5a0] sm:$0xff]  ;;  %v550_v49 = vld [vmem:[#allocation7 + $0x348] sm:$0xff]  ;;  %v780_v50 = vld [vmem:[#allocation7 + $0x598] sm:$0xff] }
  0x72   :  { %445 = vmatprep.subr.mxu1 %v378_v56  ;;  %595 = vmatprep.subr.mxu0 %v576_v57  ;;  %v549_v51 = vld [vmem:[#allocation7 + $0x340] sm:$0xff]  ;;  %v779_v52 = vld [vmem:[#allocation7 + $0x590] sm:$0xff]  ;;  %v548_v53 = vld [vmem:[#allocation7 + $0x338] sm:$0xff] }
  0x73   :  { %446 = vmatpush2.msra.mxu1 %v377_v58  ;;  %596 = vmatpush1.msra.mxu0 %v575_v59  ;;  %v778_v55 = vld [vmem:[#allocation7 + $0x588] sm:$0xff]  ;;  %v547_v56 = vld [vmem:[#allocation7 + $0x330] sm:$0xff]  ;;  %v777_v57 = vld [vmem:[#allocation7 + $0x580] sm:$0xff] }
  0x74   :  { %447 = vmatprep.subr.mxu1 %v376_v60  ;;  %597 = vmatprep.subr.mxu0 %v574_v61  ;;  %v546_v58 = vld [vmem:[#allocation7 + $0x328] sm:$0xff]  ;;  %v776_v59 = vld [vmem:[#allocation7 + $0x578] sm:$0xff]  ;;  %v545_v60 = vld [vmem:[#allocation7 + $0x320] sm:$0xff] }
  0x75   :  { %448 = vmatpush2.msra.mxu1 %v375_v62  ;;  %598 = vmatpush1.msra.mxu0 %v573_v63  ;;  %v775_v61 = vld [vmem:[#allocation7 + $0x570] sm:$0xff]  ;;  %v594_v62 = vld [vmem:[#allocation7 + $0x4a8] sm:$0xff] }
  0x76   :  { %449 = vmatprep.subr.mxu1 %v374_v1  ;;  %599 = vmatprep.subr.mxu0 %v572_v2  ;;  %v774_v63 = vld [vmem:[#allocation7 + $0x568] sm:$0xff]  ;;  %v593_v1 = vld [vmem:[#allocation7 + $0x4a0] sm:$0xff] }
  0x77   :  { %450 = vmatpush2.msra.mxu1 %v373_v3  ;;  %600 = vmatpush1.msra.mxu0 %v571_v4  ;;  %v773_v2 = vld [vmem:[#allocation7 + $0x560] sm:$0xff]  ;;  %v592_v3 = vld [vmem:[#allocation7 + $0x498] sm:$0xff] }
  0x78   :  { %451 = vmatprep.subr.mxu1 %v372_v5  ;;  %601 = vmatprep.subr.mxu0 %v570_v8  ;;  %v772_v4 = vld [vmem:[#allocation7 + $0x558] sm:$0xff]  ;;  %v591_v5 = vld [vmem:[#allocation7 + $0x490] sm:$0xff] }
  0x79   :  { %452 = vmatpush2.msra.mxu1 %v371_v9  ;;  %1156 = vmatprep.mubr.msk.f32.mxu1 %vm177_vm1, %v1414_v54  ;;  %v771_v8 = vld [vmem:[#allocation7 + $0x550] sm:$0xff]  ;;  %v590_v9 = vld [vmem:[#allocation7 + $0x488] sm:$0xff] }
  0x7a   :  { %602 = vmatpush1.msra.mxu0 %v569_v10  ;;  %454 = vmatmul.mubr.f32.vlgmr.msra.gmra.mxu1 %v1410_v45  ;;  %v770_v10 = vld [vmem:[#allocation7 + $0x548] sm:$0xff] }
  0x7b   :  { %493 = vmatprep.subr.mxu1 %v468_v11  ;;  %603 = vmatprep.subr.mxu0 %v568_v12  ;;  %v589_v11 = vld [vmem:[#allocation7 + $0x480] sm:$0xff] }
  0x7c   :  { %494 = vmatpush1.msra.mxu1 %v467_v13  ;;  %604 = vmatpush1.msra.mxu0 %v567_v14  ;;  %v769_v12 = vld [vmem:[#allocation7 + $0x540] sm:$0xff]  ;;  %v588_v13 = vld [vmem:[#allocation7 + $0x478] sm:$0xff] }
  0x7d   :  { %495 = vmatprep.subr.mxu1 %v466_v15  ;;  %605 = vmatprep.subr.mxu0 %v566_v16  ;;  %v768_v14 = vld [vmem:[#allocation7 + $0x538] sm:$0xff]  ;;  %v587_v15 = vld [vmem:[#allocation7 + $0x470] sm:$0xff] }
  0x7e   :  { %496 = vmatpush1.msra.mxu1 %v465_v17  ;;  %606 = vmatpush1.msra.mxu0 %v565_v19  ;;  %v767_v16 = vld [vmem:[#allocation7 + $0x530] sm:$0xff]  ;;  %v586_v17 = vld [vmem:[#allocation7 + $0x468] sm:$0xff] }
  0x7f   :  { %497 = vmatprep.subr.mxu1 %v464_v20  ;;  %607 = vmatprep.subr.mxu0 %v564_v21  ;;  %v766_v19 = vld [vmem:[#allocation7 + $0x528] sm:$0xff]  ;;  %v585_v20 = vld [vmem:[#allocation7 + $0x460] sm:$0xff] }
  0x80   :  { %498 = vmatpush1.msra.mxu1 %v463_v22  ;;  %608 = vmatpush1.msra.mxu0 %v563_v23  ;;  %v765_v21 = vld [vmem:[#allocation7 + $0x520] sm:$0xff]  ;;  %v584_v22 = vld [vmem:[#allocation7 + $0x458] sm:$0xff] }
  0x81   :  { %499 = vmatprep.subr.mxu1 %v462_v24  ;;  %609 = vmatprep.subr.mxu0 %v562_v25  ;;  %v764_v23 = vld [vmem:[#allocation7 + $0x518] sm:$0xff]  ;;  %v583_v24 = vld [vmem:[#allocation7 + $0x450] sm:$0xff] }
  0x82   :  { %500 = vmatpush1.msra.mxu1 %v461_v26  ;;  %533 = vmatprep.mubr.f32.mxu1 %v1324_v0  ;;  %v763_v25 = vld [vmem:[#allocation7 + $0x510] sm:$0xff]  ;;  %v582_v26 = vld [vmem:[#allocation7 + $0x448] sm:$0xff] }
  0x83   :  { %610 = vmatpush1.msra.mxu0 %v561_v27  ;;  %1157 = vmatmul.mubr.msk.f32.vlgmr.msra.gmra.mxu1 %vm259_vm0, %v1392_v18  ;;  %v762_v27 = vld [vmem:[#allocation7 + $0x508] sm:$0xff] }
  0x84   :  { %611 = vmatprep.subr.mxu0 %v560_v28  ;;  %699 = vmatprep.subr.mxu1 %v674_v29  ;;  %v581_v28 = vld [vmem:[#allocation7 + $0x440] sm:$0xff] }
  0x85   :  { %612 = vmatpush1.msra.mxu0 %v559_v30  ;;  %700 = vmatpush1.msra.mxu1 %v673_v31  ;;  %v761_v29 = vld [vmem:[#allocation7 + $0x500] sm:$0xff]  ;;  %v580_v30 = vld [vmem:[#allocation7 + $0x438] sm:$0xff] }
  0x86   :  { %613 = vmatprep.subr.mxu0 %v558_v32  ;;  %701 = vmatprep.subr.mxu1 %v672_v33  ;;  %v760_v31 = vld [vmem:[#allocation7 + $0x4f8] sm:$0xff]  ;;  %v579_v32 = vld [vmem:[#allocation7 + $0x430] sm:$0xff] }
  0x87   :  { %614 = vmatpush1.msra.mxu0 %v557_v34  ;;  %702 = vmatpush1.msra.mxu1 %v671_v35  ;;  %v759_v33 = vld [vmem:[#allocation7 + $0x4f0] sm:$0xff]  ;;  %v578_v34 = vld [vmem:[#allocation7 + $0x428] sm:$0xff] }
  0x88   :  { %615 = vmatprep.subr.mxu0 %v556_v36  ;;  %703 = vmatprep.subr.mxu1 %v670_v37  ;;  %v758_v35 = vld [vmem:[#allocation7 + $0x4e8] sm:$0xff]  ;;  %v577_v36 = vld [vmem:[#allocation7 + $0x420] sm:$0xff] }
  0x89   :  { %616 = vmatpush1.msra.mxu0 %v555_v38  ;;  %704 = vmatpush1.msra.mxu1 %v669_v39  ;;  %v757_v37 = vld [vmem:[#allocation7 + $0x4e0] sm:$0xff]  ;;  %v756_v38 = vld [vmem:[#allocation7 + $0x4d8] sm:$0xff]  ;;  %v755_v39 = vld [vmem:[#allocation7 + $0x4d0] sm:$0xff] }
  0x8a   :  { %617 = vmatprep.subr.mxu0 %v554_v40  ;;  %705 = vmatprep.subr.mxu1 %v668_v41  ;;  %v754_v40 = vld [vmem:[#allocation7 + $0x4c8] sm:$0xff]  ;;  %v753_v41 = vld [vmem:[#allocation7 + $0x4c0] sm:$0xff] }
  0x8b   :  { %618 = vmatpush1.msra.mxu0 %v553_v42  ;;  %706 = vmatpush1.msra.mxu1 %v667_v43  ;;  %v752_v42 = vld [vmem:[#allocation7 + $0x4b8] sm:$0xff]  ;;  %v751_v43 = vld [vmem:[#allocation7 + $0x4b0] sm:$0xff] }
  0x8c   :  { %739 = vmatprep.mubr.f32.mxu1 %v1324_v0  ;;  %619 = vmatprep.subr.mxu0 %v552_v44  ;;  %v800_v44 = vld [vmem:[#allocation7 + $0x638] sm:$0xff] }
  0x8d   :  { %1159 = vmatmul.mubr.msk.f32.vlgmr.msra.gmra.mxu1 %vm259_vm0, %v1392_v18  ;;  %801 = vmatprep.subr.mxu1 %v782_v46  ;;  %v799_v46 = vld [vmem:[#allocation7 + $0x630] sm:$0xff] }
  0x8e   :  { %620 = vmatpush1.msra.mxu0 %v551_v47  ;;  %802 = vmatpush1.msra.mxu1 %v781_v48  ;;  %v798_v47 = vld [vmem:[#allocation7 + $0x628] sm:$0xff]  ;;  %v797_v48 = vld [vmem:[#allocation7 + $0x620] sm:$0xff] }
  0x8f   :  { %621 = vmatprep.subr.mxu0 %v550_v49  ;;  %803 = vmatprep.subr.mxu1 %v780_v50  ;;  %v796_v49 = vld [vmem:[#allocation7 + $0x618] sm:$0xff]  ;;  %v795_v50 = vld [vmem:[#allocation7 + $0x610] sm:$0xff] }
  0x90   :  { %622 = vmatpush1.msra.mxu0 %v549_v51  ;;  %804 = vmatpush1.msra.mxu1 %v779_v52  ;;  %v794_v51 = vld [vmem:[#allocation7 + $0x608] sm:$0xff]  ;;  %v792_v52 = vld [vmem:[#allocation7 + $0x5f8] sm:$0xff] }
  0x91   :  { %623 = vmatprep.subr.mxu0 %v548_v53  ;;  %805 = vmatprep.subr.mxu1 %v778_v55  ;;  %v791_v53 = vld [vmem:[#allocation7 + $0x5f0] sm:$0xff]  ;;  %v790_v55 = vld [vmem:[#allocation7 + $0x5e8] sm:$0xff] }
  0x92   :  { %624 = vmatpush1.msra.mxu0 %v547_v56  ;;  %806 = vmatpush1.msra.mxu1 %v777_v57  ;;  %v789_v56 = vld [vmem:[#allocation7 + $0x5e0] sm:$0xff]  ;;  %v788_v57 = vld [vmem:[#allocation7 + $0x5d8] sm:$0xff] }
  0x93   :  { %625 = vmatprep.subr.mxu0 %v546_v58  ;;  %807 = vmatprep.subr.mxu1 %v776_v59  ;;  %v787_v58 = vld [vmem:[#allocation7 + $0x5d0] sm:$0xff]  ;;  %v786_v59 = vld [vmem:[#allocation7 + $0x5c8] sm:$0xff] }
  0x94   :  { %626 = vmatpush1.msra.mxu0 %v545_v60  ;;  %808 = vmatpush1.msra.mxu1 %v775_v61  ;;  %v785_v60 = vld [vmem:[#allocation7 + $0x5c0] sm:$0xff]  ;;  %v784_v61 = vld [vmem:[#allocation7 + $0x5b8] sm:$0xff] }
  0x95   :  { %641 = vmatprep.subr.mxu0 %v594_v62  ;;  %809 = vmatprep.subr.mxu1 %v774_v63  ;;  %v783_v62 = vld [vmem:[#allocation7 + $0x5b0] sm:$0xff]  ;;  %v880_v63 = vld [vmem:[#allocation8 + $0xf8] sm:$0xff] }
  0x96   :  { %642 = vmatpush2.msra.mxu0 %v593_v1  ;;  %810 = vmatpush1.msra.mxu1 %v773_v2  ;;  %v879_v1 = vld [vmem:[#allocation8 + $0xf0] sm:$0xff]  ;;  %v878_v2 = vld [vmem:[#allocation8 + $0xe8] sm:$0xff] }
  0x97   :  { %643 = vmatprep.subr.mxu0 %v592_v3  ;;  %811 = vmatprep.subr.mxu1 %v772_v4  ;;  %v877_v3 = vld [vmem:[#allocation8 + $0xe0] sm:$0xff]  ;;  %v876_v4 = vld [vmem:[#allocation8 + $0xd8] sm:$0xff] }
  0x98   :  { %644 = vmatpush2.msra.mxu0 %v591_v5  ;;  %812 = vmatpush1.msra.mxu1 %v771_v8  ;;  %v875_v5 = vld [vmem:[#allocation8 + $0xd0] sm:$0xff]  ;;  %v874_v8 = vld [vmem:[#allocation8 + $0xc8] sm:$0xff] }
  0x99   :  { %645 = vmatprep.subr.mxu0 %v590_v9  ;;  %813 = vmatprep.subr.mxu1 %v770_v10  ;;  %v873_v9 = vld [vmem:[#allocation8 + $0xc0] sm:$0xff]  ;;  %v1047_v10 = vld [vmem:[#allocation10 + $0x78] sm:$0xff] }
  0x9a   :  { %646 = vmatpush2.msra.mxu0 %v589_v11  ;;  %814 = vmatpush1.msra.mxu1 %v769_v12  ;;  %v1045_v11 = vld [vmem:[#allocation10 + $0x68] sm:$0xff]  ;;  %v1044_v12 = vld [vmem:[#allocation10 + $0x60] sm:$0xff] }
  0x9b   :  { %647 = vmatprep.subr.mxu0 %v588_v13  ;;  %815 = vmatprep.subr.mxu1 %v768_v14 }
  0x9c   :  { %648 = vmatpush2.msra.mxu0 %v587_v15  ;;  %816 = vmatpush1.msra.mxu1 %v767_v16 }
  0x9d   :  { %649 = vmatprep.subr.mxu0 %v586_v17  ;;  %817 = vmatprep.subr.mxu1 %v766_v19 }
  0x9e   :  { %650 = vmatpush2.msra.mxu0 %v585_v20  ;;  %818 = vmatpush1.msra.mxu1 %v765_v21 }
  0x9f   :  { %651 = vmatprep.subr.mxu0 %v584_v22  ;;  %819 = vmatprep.subr.mxu1 %v764_v23 }
  0xa0   :  { %652 = vmatpush2.msra.mxu0 %v583_v24  ;;  %820 = vmatpush1.msra.mxu1 %v763_v25 }
  0xa1   :  { %653 = vmatprep.subr.mxu0 %v582_v26  ;;  %821 = vmatprep.subr.mxu1 %v762_v27 }
  0xa2   :  { %654 = vmatpush2.msra.mxu0 %v581_v28  ;;  %822 = vmatpush1.msra.mxu1 %v761_v29 }
  0xa3   :  { %655 = vmatprep.subr.mxu0 %v580_v30  ;;  %823 = vmatprep.subr.mxu1 %v760_v31 }
  0xa4   :  { %656 = vmatpush2.msra.mxu0 %v579_v32  ;;  %824 = vmatpush1.msra.mxu1 %v759_v33 }
  0xa5   :  { %657 = vmatprep.subr.mxu0 %v578_v34  ;;  %825 = vmatprep.subr.mxu1 %v758_v35 }
  0xa6   :  { %658 = vmatpush2.msra.mxu0 %v577_v36  ;;  %1158 = vmatprep.mubr.msk.f32.mxu0 %vm177_vm1, %v1414_v54 }
  0xa7   :  { %826 = vmatpush1.msra.mxu1 %v757_v37  ;;  %660 = vmatmul.mubr.f32.vlgmr.msra.gmra.mxu0 %v1410_v45 }
  0xa8   :  { %827 = vmatprep.subr.mxu1 %v756_v38  ;;  %1160 = vmatprep.mubr.msk.f32.mxu1 %vm177_vm1, %v1414_v54  ;;  %v793_v54 = vld [vmem:[#allocation7 + $0x600] sm:$0xff] }
  0xa9   :  { %828 = vmatpush1.msra.mxu1 %v755_v39  ;;  %1060 = vmatprep.subr.mxu0 %v1324_v0 }
  0xaa   :  { %829 = vmatprep.subr.mxu1 %v754_v40  ;;  %1061 = vmatpush1.msra.mxu0 %v1047_v10  ;;  %v1041_v10 = vld [vmem:[#allocation10 + $0x48] sm:$0xff] }
  0xab   :  { %830 = vmatpush1.msra.mxu1 %v753_v41  ;;  %1062 = vmatprep.subr.mxu0 %v1324_v0 }
  0xac   :  { %831 = vmatprep.subr.mxu1 %v752_v42 }
  0xad   :  { %832 = vmatpush1.msra.mxu1 %v751_v43 }
  0xae   :  { %847 = vmatprep.subr.mxu1 %v800_v44 }
  0xaf   :  { %848 = vmatpush2.msra.mxu1 %v799_v46 }
  0xb0   :  { %849 = vmatprep.subr.mxu1 %v798_v47 }
  0xb1   :  { %850 = vmatpush2.msra.mxu1 %v797_v48 }
  0xb2   :  { %851 = vmatprep.subr.mxu1 %v796_v49 }
  0xb3   :  { %852 = vmatpush2.msra.mxu1 %v795_v50 }
  0xb4   :  { %853 = vmatprep.subr.mxu1 %v794_v51 }
  0xb5   :  { %854 = vmatpush2.msra.mxu1 %v793_v54 }
  0xb6   :  { %855 = vmatprep.subr.mxu1 %v792_v52 }
  0xb7   :  { %856 = vmatpush2.msra.mxu1 %v791_v53 }
  0xb8   :  { %857 = vmatprep.subr.mxu1 %v790_v55 }
  0xb9   :  { %858 = vmatpush2.msra.mxu1 %v789_v56 }
  0xba   :  { %859 = vmatprep.subr.mxu1 %v788_v57 }
  0xbb   :  { %860 = vmatpush2.msra.mxu1 %v787_v58 }
  0xbc   :  { %861 = vmatprep.subr.mxu1 %v786_v59 }
  0xbd   :  { %862 = vmatpush2.msra.mxu1 %v785_v60 }
  0xbe   :  { %863 = vmatprep.subr.mxu1 %v784_v61 }
  0xbf   :  { %864 = vmatpush2.msra.mxu1 %v783_v62 }
  0xc0   :  { %866 = vmatmul.mubr.f32.vlgmr.msra.gmra.mxu1 %v1410_v45  ;;  %905 = vmatprep.subr.mxu1 %v880_v63  ;;  %v1046_v45 = vld [vmem:[#allocation10 + $0x70] sm:$0xff] }
  0xc1   :  { %906 = vmatpush1.msra.mxu1 %v879_v1  ;;  %945 = vmatprep.mubr.f32.mxu1 %v1324_v0 }
  0xc2   :  { %907 = vmatprep.subr.mxu1 %v878_v2  ;;  %1063 = vmatpush1.msra.mxu0 %v1046_v45  ;;  %v1040_v45 = vld [vmem:[#allocation10 + $0x40] sm:$0xff] }
  0xc3   :  { %908 = vmatpush1.msra.mxu1 %v877_v3  ;;  %1064 = vmatprep.subr.mxu0 %v1324_v0 }
  0xc4   :  { %909 = vmatprep.subr.mxu1 %v876_v4  ;;  %1065 = vmatpush1.msra.mxu0 %v1045_v11  ;;  %v1039_v11 = vld [vmem:[#allocation10 + $0x38] sm:$0xff] }
  0xc5   :  { %910 = vmatpush1.msra.mxu1 %v875_v5  ;;  %1066 = vmatprep.subr.mxu0 %v1324_v0 }
  0xc6   :  { %911 = vmatprep.subr.mxu1 %v874_v8  ;;  %1067 = vmatpush1.msra.mxu0 %v1044_v12  ;;  %v1043_v8 = vld [vmem:[#allocation10 + $0x58] sm:$0xff]  ;;  %v1038_v12 = vld [vmem:[#allocation10 + $0x30] sm:$0xff] }
  0xc7   :  { %912 = vmatpush1.msra.mxu1 %v873_v9  ;;  %1068 = vmatprep.subr.mxu0 %v1324_v0  ;;  %v1042_v9 = vld [vmem:[#allocation10 + $0x50] sm:$0xff] }
  0xc8   :  { %1161 = vmatmul.mubr.msk.f32.vlgmr.msra.gmra.mxu1 %vm259_vm0, %v1392_v18  ;;  %1069 = vmatpush1.msra.mxu0 %v1043_v8 }
  0xc9   :  { %1070 = vmatprep.subr.mxu0 %v1324_v0 }
  0xca   :  { %1071 = vmatpush1.msra.mxu0 %v1042_v9 }
  0xcb   :  { %1072 = vmatprep.subr.mxu0 %v1324_v0 }
  0xcc   :  { %1073 = vmatpush1.msra.mxu0 %v1041_v10 }
  0xcd   :  { %1074 = vmatprep.subr.mxu0 %v1324_v0 }
  0xce   :  { %1075 = vmatpush1.msra.mxu0 %v1040_v45 }
  0xcf   :  { %1076 = vmatprep.subr.mxu0 %v1324_v0 }
  0xd0   :  { %1077 = vmatpush1.msra.mxu0 %v1039_v11 }
  0xd1   :  { %1078 = vmatprep.subr.mxu0 %v1324_v0 }
  0xd2   :  { %1079 = vmatpush1.msra.mxu0 %v1038_v12 }
  0xd3   :  { %1080 = vmatprep.subr.mxu0 %v1324_v0 }
 0x107   :  { %v329_v13 = vpop.f32.mrf.mxu1 }
 0x109   :  { %v331_v14 = vpop.f32.mrf.mxu1 }
 0x131   :  { %v246_v17 = vpop.f32.mrf.mxu0 }
 0x132   :  { %v334_v27 = vmul.f32 %v329_v13, %v246_v17  ;;  %v1037_v13 = vld [vmem:[#allocation10 + $0x28] sm:$0xff]  ;;  %v1032_v17 = vld [vmem:[#allocation10] sm:$0xff] }
 0x133   :  { %v248_v21 = vpop.f32.mrf.mxu0  ;;  %1081 = vmatpush1.msra.mxu0 %v1037_v13 }
 0x134   :  { %v335_v31 = vmul.f32 %v331_v14, %v248_v21  ;;  %1082 = vmatprep.subr.mxu0 %v1324_v0  ;;  %v1036_v14 = vld [vmem:[#allocation10 + $0x20] sm:$0xff]  ;;  %v1054_v21 = vld [vmem:[#allocation10 + $0xb0] sm:$0xff] }
 0x135   :  { %1083 = vmatpush1.msra.mxu0 %v1036_v14 }
 0x136   :  { %1084 = vmatprep.subr.mxu0 %v1324_v0 }
 0x13a   :  { %v455_v15 = vpop.f32.mrf.mxu1 }
 0x13c   :  { %v457_v18 = vpop.f32.mrf.mxu1 }
 0x143   :  { %v535_v16 = vpop.f32.mrf.mxu1 }
 0x144   :  { %v540_v25 = vmul.f32 %v535_v16, %v455_v15  ;;  %v1035_v15 = vld [vmem:[#allocation10 + $0x18] sm:$0xff]  ;;  %v1033_v16 = vld [vmem:[#allocation10 + $0x8] sm:$0xff] }
 0x145   :  { %v537_v19 = vpop.f32.mrf.mxu1  ;;  %1085 = vmatpush1.msra.mxu0 %v1035_v15 }
 0x146   :  { %v541_v28 = vmul.f32 %v537_v19, %v457_v18  ;;  %v542_v32 = vadd.f32 %v540_v25, %v334_v27  ;;  %1086 = vmatprep.subr.mxu0 %v1324_v0  ;;  %v1034_v18 = vld [vmem:[#allocation10 + $0x10] sm:$0xff]  ;;  %v1056_v19 = vld [vmem:[#allocation10 + $0xc0] sm:$0xff] }
 0x147   :  { %1087 = vmatpush1.msra.mxu0 %v1034_v18  ;;  %v1050_v25 = vld [vmem:[#allocation10 + $0x90] sm:$0xff]  ;;  %v1048_v27 = vld [vmem:[#allocation10 + $0x80] sm:$0xff] }
 0x148   :  { %v543_v35 = vadd.f32 %v541_v28, %v335_v31  ;;  %1088 = vmatprep.subr.mxu0 %v1324_v0 }
 0x149   :  { %1089 = vmatpush1.msra.mxu0 %v1033_v16 }
 0x14a   :  { %1090 = vmatprep.subr.mxu0 %v1324_v0 }
 0x14b   :  { %1091 = vmatpush1.msra.mxu0 %v1032_v17 }
 0x14c   :  { %1106 = vmatprep.subr.mxu0 %v1324_v0 }
 0x14d   :  { %v741_v20 = vpop.f32.mrf.mxu1  ;;  %1107 = vmatpush2.msra.mxu0 %v1056_v19 }
 0x14e   :  { %1108 = vmatprep.subr.mxu0 %v1324_v0 }
 0x14f   :  { %v743_v22 = vpop.f32.mrf.mxu1 }
 0x167   :  { %v661_v23 = vpop.f32.mrf.mxu0 }
 0x168   :  { %v746_v29 = vmul.f32 %v741_v20, %v661_v23  ;;  %v1055_v20 = vld [vmem:[#allocation10 + $0xb8] sm:$0xff]  ;;  %v1052_v23 = vld [vmem:[#allocation10 + $0xa0] sm:$0xff] }
 0x169   :  { %v663_v26 = vpop.f32.mrf.mxu0  ;;  %1109 = vmatpush2.msra.mxu0 %v1055_v20 }
 0x16a   :  { %v747_v33 = vmul.f32 %v743_v22, %v663_v26  ;;  %v748_v36 = vadd.f32 %v746_v29, %v542_v32  ;;  %1110 = vmatprep.subr.mxu0 %v1324_v0  ;;  %v1053_v22 = vld [vmem:[#allocation10 + $0xa8] sm:$0xff] }
 0x16b   :  { %1111 = vmatpush2.msra.mxu0 %v1054_v21  ;;  %v1049_v26 = vld [vmem:[#allocation10 + $0x88] sm:$0xff] }
 0x16c   :  { %v749_v39 = vadd.f32 %v747_v33, %v543_v35  ;;  %1112 = vmatprep.subr.mxu0 %v1324_v0  ;;  %v1004_v35 = vld [vmem:[%s1495_s7] sm:$0x3]  ;;  %s1325_s7 = smov [#allocation11]  }
 0x16d   :  { %1113 = vmatpush2.msra.mxu0 %v1053_v22 }
 0x16e   :  { %1114 = vmatprep.subr.mxu0 %v1324_v0 }
 0x16f   :  { %1115 = vmatpush2.msra.mxu0 %v1052_v23 }
 0x170   :  { %1116 = vmatprep.subr.mxu0 %v1324_v0 }
 0x180   :  { %v867_v24 = vpop.f32.mrf.mxu1 }
 0x182   :  { %v869_v30 = vpop.f32.mrf.mxu1 }
 0x188   :  { %v947_v34 = vpop.f32.mrf.mxu1 }
 0x189   :  { %v952_v37 = vmul.f32 %v947_v34, %v867_v24  ;;  %v1051_v24 = vld [vmem:[#allocation10 + $0x98] sm:$0xff] }
 0x18a   :  { %v949_v38 = vpop.f32.mrf.mxu1  ;;  %1117 = vmatpush2.msra.mxu0 %v1051_v24 }
 0x18b   :  { %v954_v40 = vadd.f32 %v952_v37, %v748_v36  ;;  %v953_v41 = vmul.f32 %v949_v38, %v869_v30  ;;  %1118 = vmatprep.subr.mxu0 %v1324_v0  ;;  %v1013_v36 = vrot.slane %v1004_v35, %v1398_v7  ;;  %v1009_v37 = vrot.slane %v1004_v35, %v1396_v6 }
 0x18c   :  { %1119 = vmatpush2.msra.mxu0 %v1050_v25 }
 0x18d   :  { %v964_v42 = vand.u32 2147483647, %v954_v40  ;;  %v955_v43 = vadd.f32 %v953_v41, %v749_v39  ;;  %vm958_vm2 = vcmp.lt.f32.partialorder %v954_v40, 0.0  ;;  %vm956_vm4 = vcmp.gt.f32.partialorder %v954_v40, 0.0  ;;  %1120 = vmatprep.subr.mxu0 %v1324_v0 }
 0x18e   :  { %v960_v49 = vsel %vm958_vm2, -1.0, %v1324_v0  ;;  %1121 = vmatpush2.msra.mxu0 %v1049_v26 }
 0x18f   :  { %v966_v44 = vadd.f32 1e-12, %v964_v42  ;;  %v965_v46 = vand.u32 2147483647, %v955_v43  ;;  %vm959_vm3 = vcmp.lt.f32.partialorder %v955_v43, 0.0  ;;  %vm957_vm5 = vcmp.gt.f32.partialorder %v955_v43, 0.0  ;;  %1122 = vmatprep.subr.mxu0 %v1324_v0 }
 0x190   :  { %v961_v52 = vsel %vm959_vm3, -1.0, %v1324_v0  ;;  %v962_v56 = vsel %vm956_vm4, 1.0, %v960_v49  ;;  %1123 = vmatpush2.msra.mxu0 %v1048_v27  ;;  %v1018_v0 = vld [vmem:[%s1496_s8] sm:$0x3]  ;;  %s1143_s8 = sshll.u32 %s1325_s7, 4  ;;  %s1144_s8 = int_to_ptr.vmem [resolvable:$true] %s1143_s8 }
 0x191   :  { %1175 = vrsqrt.f32 %v966_v44  ;;  %v967_v47 = vadd.f32 1e-12, %v965_v46  ;;  %vm970_vm6 = vcmp.eq.f32.partialorder %v966_v44, inf  ;;  %v973_v54 = vand.u32 2147483648, %v966_v44  ;;  %s1287_s18 = scalar_lea.vmem %s1144_s8, 64  ;;  %p1292_p12 = scmp.lt.s32.totalorder %s1144_s8, %s1144_s8 }
 0x192   :  { %vm972_vm7 = vcmp.eq.f32.partialorder %v966_v44, 0.0  ;;  %v963_v61 = vsel %vm957_vm5, 1.0, %v961_v52  ;;  %v1027_v40 = vrot.slane %v1018_v0, %v1398_v7  ;;  %v1023_v42 = vrot.slane %v1018_v0, %v1396_v6  ;;  %p1288_p11 = scmp.ne.s32.totalorder %s1144_s8, %s1287_s18  ;;  %p1293_p13 = scmp.lt.s32.totalorder %s1287_s18, %s1287_s18 }
 0x193   :  { %1177 = vrsqrt.f32 %v967_v47  ;;  %vm977_vm8 = vcmp.eq.f32.partialorder %v967_v47, inf  ;;  %v980_v58 = vand.u32 2147483648, %v967_v47  ;;  %vm979_vm9 = vcmp.eq.f32.partialorder %v967_v47, 0.0 }
 0x194   :  { %p1294_p0 = por %p1293_p13, %p1292_p12 }
 0x196   :  { %p1295_p1 = pnand %p1294_p0, %p1288_p11 }
 0x19e   :  { %v1176_v48 = vpop.eup %1175 }
 0x19f   :  { %v969_v50 = vmul.f32 %v1176_v48, %v966_v44 }
 0x1a0   :  { %v1178_v51 = vpop.eup %1177 }
 0x1a1   :  { %v971_v53 = vsel %vm970_vm6, %v966_v44, %v969_v50  ;;  %v976_v55 = vmul.f32 %v1178_v51, %v967_v47 }
 0x1a2   :  { %v974_v57 = vsel %vm972_vm7, %v973_v54, %v971_v53 }
 0x1a3   :  { %v978_v59 = vsel %vm977_vm8, %v967_v47, %v976_v55  ;;  %v1444_v60 = vmul.f32 %v974_v57, %v962_v56 }
 0x1a4   :  { %v981_v62 = vsel %vm979_vm9, %v980_v58, %v978_v59 }
 0x1a5   :  { %v1446_v63 = vmul.f32 %v981_v62, %v963_v61  ;;  %v984_v1 = vmul.f32 %v1444_v60, %v1444_v60 }
 0x1a7   :  { %v985_v2 = vmul.f32 %v1446_v63, %v1446_v63  ;;  %v987_v3 = vsel %vm986_vm10, %v984_v1, 0.0 }
 0x1a9   :  { %v989_v4 = vsel %vm988_vm11, %v985_v2, 0.0 }
 0x1aa   :  { %v990_v5 = vadd.f32 %v989_v4, %v987_v3 }
 0x1ac   :  { %991 = vadd.xlane.f32.xlu0 %v990_v5 }
 0x235   :  { %v992_v28 = vpop.xlane.xlu0 %991 }
 0x236   :  { %1179 = vrsqrt.f32 %v992_v28  ;;  %vm995_vm12 = vcmp.eq.f32.partialorder %v992_v28, inf  ;;  %v998_v31 = vand.u32 2147483648, %v992_v28  ;;  %vm997_vm13 = vcmp.eq.f32.partialorder %v992_v28, 0.0 }
 0x243   :  { %v1180_v29 = vpop.eup %1179 }
 0x244   :  { %v994_v30 = vmul.f32 %v1180_v29, %v992_v28 }
 0x246   :  { %v996_v32 = vsel %vm995_vm12, %v992_v28, %v994_v30 }
 0x247   :  { %v999_v33 = vsel %vm997_vm13, %v998_v31, %v996_v32 }
 0x248   :  { %v1000_v34 = vmax.f32 %v999_v33, 1e-12 }
 0x24a   :  { %1181 = vrcp.f32 %v1000_v34 }
 0x257   :  { %v1182_v38 = vpop.eup %1181 }
 0x258   :  { %v1003_v39 = vmul.f32 %v1182_v38, %v1446_v63  ;;  %v1002_v41 = vmul.f32 %v1182_v38, %v1444_v60 }
 0x25a   :  { %v1017_v43 = vmul.f32 %v1013_v36, %v1003_v39  ;;  %v1016_v44 = vmul.f32 %v1009_v37, %v1002_v41 }
 0x25c   :  { %v1031_v46 = vadd.f32 %v1027_v40, %v1017_v43  ;;  %v1030_v47 = vadd.f32 %v1023_v42, %v1016_v44 }
 0x25e   :  { %1162 = vmatprep.mubr.msk.f32.mxu0 %vm177_vm1, %v1031_v46 }
 0x25f   :  { %1125 = vmatmul.mubr.f32.vlgmr.msra.gmra.mxu0 %v1030_v47 }
 0x31f   :  { %v1126_v48 = vpop.f32.mrf.mxu0 }
 0x320   :  { %v1163_v49 = vmul.f32 -1.442695, %v1126_v48 }
 0x321   :  { %v1128_v50 = vpop.f32.mrf.mxu0 }
 0x322   :  { %1183 = vpow2.f32 %v1163_v49 }
 0x32f   :  { %v1184_v51 = vpop.eup %1183 }
 0x330   :  { %v1133_v54 = vadd.f32 1.0, %v1184_v51 }
 0x332   :  { %1185 = vrcp.f32 %v1133_v54 }
 0x33f   :  { %v1186_v7 = vpop.eup %1185 }
 0x340   :  { %1136 = vst [vmem:[#allocation11] sm:$0xf] %v1186_v7 }
 0x341   :  { %1298 = shalt.err (!%p1295_p1)
}
 0x342   :  { %1146 = dma.vmem_to_hbm [thread:$0]  %s1144_s8, 64, %s1497_s9, [#allocation4]  }
 0x343   :  { %1313 = dma.done.wait [#allocation4], 64  }
 0x344   :  { %1314 = vsyncadd [#allocation4], 4294967232 }
 0x345   :  { %1150 = vsyncpa [#allocation3], 1 }
 0x346   :  { %1151 = vsyncpa [#allocation6], 1 }
 0x347   :  { %1152 = vsyncpa [#allocation9], 1 }
 0x348   :  { %1153 = vsyncpa [#allocation4], 1 }

</bundles_post_ra>
